<compile_context>
chip_gen: v7x
topology: tpu7x:2x2x1
jax: 0.10.0
libtpu: 0.0.40
codegen_flags: <defaults>
</compile_context>

<pallas_src>
import functools

import jax
import jax.numpy as jnp
from jax.experimental import pallas as pl
from jax.experimental.pallas import tpu as pltpu


HIDDEN = 256   # nn.Linear(embed, 256) / nn.Linear(256, 256)


def _round_up(x, m):
    return ((x + m - 1) // m) * m


def _decoder_kernel(x_ref, w1_ref, b1_ref, w2_ref, b2_ref, w3_ref, b3_ref,
                    o_ref):
    """Fused 3-layer MLP: relu(relu(x@W1+b1)@W2+b2)@W3+b3 for one row tile.

    Matmul operands are bf16 (MXU); accumulation, bias add and ReLU stay f32.
    """
    x = x_ref[...].astype(jnp.bfloat16)   # no-op if x is already bf16
    h1 = jnp.dot(x, w1_ref[...], preferred_element_type=jnp.float32)
    h1 = jnp.maximum(h1 + b1_ref[...], 0.0)                       # ReLU
    h2 = jnp.dot(h1.astype(jnp.bfloat16), w2_ref[...],
                 preferred_element_type=jnp.float32)
    h2 = jnp.maximum(h2 + b2_ref[...], 0.0)                       # ReLU
    out = jnp.dot(h2.astype(jnp.bfloat16), w3_ref[...],
                  preferred_element_type=jnp.float32)
    o_ref[...] = (out + b3_ref[...]).astype(o_ref.dtype)


@functools.partial(jax.jit, static_argnames=("block_rows",))
def observation_decoder_mean(x, params, *, block_rows=1024):
    """Computes the Normal mean of ObservationDecoder.forward.

    x: (*batch_shape, embed_size), f32 or bf16
    params: output of prepare_params() — bf16 (in, out) weights, f32 (1, N) biases
    returns: (*batch_shape, obs_size) float32
    """
    w1, b1, w2, b2, w3, b3 = params
    embed_size = w1.shape[0]
    obs_size = w3.shape[1]

    batch_shape = x.shape[:-1]
    xf = x.reshape(-1, embed_size)                    # x.view(-1, embed)
    n_rows = xf.shape[0]
    x_itemsize = jnp.dtype(x.dtype).itemsize

    # Row tile: as big as possible (multiple of 8 sublanes). Only split into
    # two grid programs (so the row axis can shard across v7x's two
    # TensorCores) when each half still feeds the MXU with >=256 rows; on
    # single-TC v5e/v6e a split of small batches is pure overhead.
    if n_rows <= 8:
        rows_eff = n_rows                 # block == full array dim (allowed)
    else:
        rows_eff = min(block_rows, _round_up(n_rows, 8))
        if rows_eff >= n_rows and n_rows >= 512:
            rows_eff = _round_up((n_rows + 1) // 2, 8)   # 2 balanced tiles
    grid = (pl.cdiv(n_rows, rows_eff),)

    # Static VMEM budget: double-buffered x/out tiles, single-buffered bf16
    # weights (pl.Buffered(1)), f32 biases, f32 intermediates + bf16 copies.
    vmem_needed = (
        2 * rows_eff * embed_size * x_itemsize
        + 2 * rows_eff * obs_size * 4
        + (embed_size * HIDDEN + HIDDEN * HIDDEN + HIDDEN * obs_size) * 2
        + (2 * HIDDEN + obs_size) * 4
        + rows_eff * HIDDEN * (4 + 4 + 2 + 2)
        + rows_eff * obs_size * 4
    )
    vmem_limit_bytes = int(min(max(2 * vmem_needed, 32 << 20), 56 << 20))

    flops = 2 * n_rows * (embed_size * HIDDEN + HIDDEN * HIDDEN
                          + HIDDEN * obs_size)
    bytes_accessed = (xf.size * x_itemsize
                      + (w1.size + w2.size + w3.size) * 2
                      + (b1.size + b2.size + b3.size) * 4
                      + n_rows * obs_size * 4)

    # Constant (never re-indexed) operands: single VMEM buffer is enough.
    const_block = lambda shape: pl.BlockSpec(
        shape, lambda i: (0, 0), pipeline_mode=pl.Buffered(1))

    mean_flat = pl.pallas_call(
        _decoder_kernel,
        out_shape=jax.ShapeDtypeStruct((n_rows, obs_size), jnp.float32),
        grid_spec=pltpu.PrefetchScalarGridSpec(
            num_scalar_prefetch=0,
            grid=grid,
            in_specs=[
                # activations: tile over rows (ragged tail handled by Pallas).
                # If a profile on v6e shows exposed DMA between grid steps,
                # add pipeline_mode=pl.Buffered(3) here and on out_specs.
                pl.BlockSpec((rows_eff, embed_size), lambda i: (i, 0)),
                # weights / biases: full blocks, resident across the grid
                const_block((embed_size, HIDDEN)),
                const_block((1, HIDDEN)),
                const_block((HIDDEN, HIDDEN)),
                const_block((1, HIDDEN)),
                const_block((HIDDEN, obs_size)),
                const_block((1, obs_size)),
            ],
            out_specs=pl.BlockSpec((rows_eff, obs_size), lambda i: (i, 0)),
        ),
        compiler_params=pltpu.CompilerParams(
            dimension_semantics=("parallel",),
            vmem_limit_bytes=vmem_limit_bytes),
        cost_estimate=pl.CostEstimate(
            flops=flops, transcendentals=0, bytes_accessed=bytes_accessed),
    )(xf, w1, b1, w2, b2, w3, b3)

    # (n_rows, obs) -> (*batch_shape, obs): metadata-only reshape, no copy.
    return mean_flat.reshape(*batch_shape, obs_size)


def prepare_params(params):
    """One-time (outside the hot path) cast of weights to bf16 for the MXU.

    Biases stay f32 (added into f32 accumulators) and are reshaped to (1, N)
    so they are 2-D VMEM blocks.
    """
    w1, b1, w2, b2, w3, b3 = params
    return (w1.astype(jnp.bfloat16), b1.reshape(1, -1).astype(jnp.float32),
            w2.astype(jnp.bfloat16), b2.reshape(1, -1).astype(jnp.float32),
            w3.astype(jnp.bfloat16), b3.reshape(1, -1).astype(jnp.float32))


def independent_normal_log_prob(mean, value):
    """log_prob of td.Independent(td.Normal(mean, 1), 1) — plain-JAX glue."""
    log_unnorm = -0.5 * (value - mean) ** 2
    log_norm = -0.5 * jnp.log(2.0 * jnp.pi)
    return jnp.sum(log_unnorm + log_norm, axis=-1)


def init_params(key, embed_size, obs_size):
    """Deterministic synthetic parameters (weights stored as (in, out))."""
    k1, k2, k3, k4, k5, k6 = jax.random.split(key, 6)
    w1 = jax.random.normal(k1, (embed_size, HIDDEN), jnp.float32) / jnp.sqrt(embed_size)
    b1 = jax.random.normal(k2, (HIDDEN,), jnp.float32) * 0.01
    w2 = jax.random.normal(k3, (HIDDEN, HIDDEN), jnp.float32) / jnp.sqrt(HIDDEN)
    b2 = jax.random.normal(k4, (HIDDEN,), jnp.float32) * 0.01
    w3 = jax.random.normal(k5, (HIDDEN, obs_size), jnp.float32) / jnp.sqrt(HIDDEN)
    b3 = jax.random.normal(k6, (obs_size,), jnp.float32) * 0.01
    return (w1, b1, w2, b2, w3, b3)


def _reference_mean(x, params):
    """Pure-JAX reference matching the kernel's numerics (bf16 operands, f32 acc)."""
    w1, b1, w2, b2, w3, b3 = params
    bf = jnp.bfloat16
    batch_shape = x.shape[:-1]
    xf = x.reshape(-1, x.shape[-1]).astype(bf)
    h1 = jnp.maximum(
        jnp.dot(xf, w1.astype(bf), preferred_element_type=jnp.float32) + b1, 0.0)
    h2 = jnp.maximum(
        jnp.dot(h1.astype(bf), w2.astype(bf),
                preferred_element_type=jnp.float32) + b2, 0.0)
    out = jnp.dot(h2.astype(bf), w3.astype(bf),
                  preferred_element_type=jnp.float32) + b3
    return out.reshape(*batch_shape, -1)


if __name__ == "__main__":
    embed_size = 32
    obs_size = 16
    batch_shape = (2, 8)   # e.g. (batch, seq) -> n_rows = 16

    key = jax.random.PRNGKey(0)
    k_x, k_p = jax.random.split(key)
    x = jax.random.normal(k_x, (*batch_shape, embed_size), jnp.float32)
    params = init_params(k_p, embed_size, obs_size)
    kernel_params = prepare_params(params)   # bf16 weights, cast once

    mean = observation_decoder_mean(x, kernel_params)
    mean = jax.block_until_ready(mean)

    # Sanity check against a pure-JAX reference of the same (bf16-MXU) forward.
    ref = _reference_mean(x, params)
    assert mean.shape == (*batch_shape, obs_size)
    assert jnp.allclose(mean, ref, atol=1e-2, rtol=1e-2), "mismatch vs reference"

    # Distribution wrapper (Normal(mean, 1), Independent over last dim) — glue.
    # TODO(synk): the td.Independent(td.Normal(...)) object itself has no
    # kernel equivalent; only its sufficient statistic (mean) is computed.
    lp = independent_normal_log_prob(mean, ref)
    jax.block_until_ready(lp)

    print("KERNEL_OK")
</pallas_src>

<mosaic_0001>
module attributes {stable_mosaic.version = 11 : i64} {
  func.func @_decoder_kernel(%arg0: i32, %arg1: memref<16x32xf32, #tpu.memory_space<vmem>>, %arg2: memref<32x256xbf16, #tpu.memory_space<vmem>>, %arg3: memref<1x256xf32, #tpu.memory_space<vmem>>, %arg4: memref<256x256xbf16, #tpu.memory_space<vmem>>, %arg5: memref<1x256xf32, #tpu.memory_space<vmem>>, %arg6: memref<256x16xbf16, #tpu.memory_space<vmem>>, %arg7: memref<1x16xf32, #tpu.memory_space<vmem>>, %arg8: memref<16x16xf32, #tpu.memory_space<vmem>>) attributes {dimension_semantics = [#tpu.dimension_semantics<parallel>], iteration_bounds = array<i64: 1>, scalar_prefetch = 0 : i64, scratch_operands = 0 : i64, tpu.core_type = #tpu.core_type<tc>, window_params = [{transform_indices = @transform_0, window_bounds = array<i64: 16, 32>}, {pipeline_mode = #tpu.pipeline_mode<synchronous>, transform_indices = @transform_1, window_bounds = array<i64: 32, 256>}, {pipeline_mode = #tpu.pipeline_mode<synchronous>, transform_indices = @transform_2, window_bounds = array<i64: 1, 256>}, {pipeline_mode = #tpu.pipeline_mode<synchronous>, transform_indices = @transform_3, window_bounds = array<i64: 256, 256>}, {pipeline_mode = #tpu.pipeline_mode<synchronous>, transform_indices = @transform_4, window_bounds = array<i64: 1, 256>}, {pipeline_mode = #tpu.pipeline_mode<synchronous>, transform_indices = @transform_5, window_bounds = array<i64: 256, 16>}, {pipeline_mode = #tpu.pipeline_mode<synchronous>, transform_indices = @transform_6, window_bounds = array<i64: 1, 16>}, {transform_indices = @transform_7, window_bounds = array<i64: 16, 16>}]} {
    %c0 = arith.constant 0 : index
    %c0_0 = arith.constant 0 : index
    %0 = vector.load %arg1[%c0, %c0_0] : memref<16x32xf32, #tpu.memory_space<vmem>>, vector<16x32xf32>
    %1 = arith.truncf %0 : vector<16x32xf32> to vector<16x32xbf16>
    %c0_1 = arith.constant 0 : index
    %c0_2 = arith.constant 0 : index
    %2 = vector.load %arg2[%c0_1, %c0_2] : memref<32x256xbf16, #tpu.memory_space<vmem>>, vector<32x256xbf16>
    %cst = arith.constant dense<0.000000e+00> : vector<16x256xf32>
    %3 = tpu.matmul %1, %2, %cst {dimension_numbers = #tpu.dot_dimension_numbers<[1], [0], [0], [1], [0, 0, 1, 1], [], []>} : vector<16x32xbf16>, vector<32x256xbf16>, vector<16x256xf32> -> vector<16x256xf32>
    %c0_3 = arith.constant 0 : index
    %c0_4 = arith.constant 0 : index
    %4 = vector.load %arg3[%c0_3, %c0_4] : memref<1x256xf32, #tpu.memory_space<vmem>>, vector<1x256xf32>
    %5 = vector.broadcast %4 : vector<1x256xf32> to vector<16x256xf32>
    %6 = arith.addf %3, %5 : vector<16x256xf32>
    %cst_5 = arith.constant 0.000000e+00 : f32
    %7 = vector.broadcast %cst_5 : f32 to vector<16x256xf32>
    %8 = arith.maximumf %6, %7 : vector<16x256xf32>
    %9 = arith.truncf %8 : vector<16x256xf32> to vector<16x256xbf16>
    %c0_6 = arith.constant 0 : index
    %c0_7 = arith.constant 0 : index
    %10 = vector.load %arg4[%c0_6, %c0_7] : memref<256x256xbf16, #tpu.memory_space<vmem>>, vector<256x256xbf16>
    %cst_8 = arith.constant dense<0.000000e+00> : vector<16x256xf32>
    %11 = tpu.matmul %9, %10, %cst_8 {dimension_numbers = #tpu.dot_dimension_numbers<[1], [0], [0], [1], [0, 0, 1, 1], [], []>} : vector<16x256xbf16>, vector<256x256xbf16>, vector<16x256xf32> -> vector<16x256xf32>
    %c0_9 = arith.constant 0 : index
    %c0_10 = arith.constant 0 : index
    %12 = vector.load %arg5[%c0_9, %c0_10] : memref<1x256xf32, #tpu.memory_space<vmem>>, vector<1x256xf32>
    %13 = vector.broadcast %12 : vector<1x256xf32> to vector<16x256xf32>
    %14 = arith.addf %11, %13 : vector<16x256xf32>
    %cst_11 = arith.constant 0.000000e+00 : f32
    %15 = vector.broadcast %cst_11 : f32 to vector<16x256xf32>
    %16 = arith.maximumf %14, %15 : vector<16x256xf32>
    %17 = arith.truncf %16 : vector<16x256xf32> to vector<16x256xbf16>
    %c0_12 = arith.constant 0 : index
    %c0_13 = arith.constant 0 : index
    %18 = vector.load %arg6[%c0_12, %c0_13] : memref<256x16xbf16, #tpu.memory_space<vmem>>, vector<256x16xbf16>
    %cst_14 = arith.constant dense<0.000000e+00> : vector<16x16xf32>
    %19 = tpu.matmul %17, %18, %cst_14 {dimension_numbers = #tpu.dot_dimension_numbers<[1], [0], [0], [1], [0, 0, 1, 1], [], []>} : vector<16x256xbf16>, vector<256x16xbf16>, vector<16x16xf32> -> vector<16x16xf32>
    %c0_15 = arith.constant 0 : index
    %c0_16 = arith.constant 0 : index
    %20 = vector.load %arg7[%c0_15, %c0_16] : memref<1x16xf32, #tpu.memory_space<vmem>>, vector<1x16xf32>
    %21 = vector.broadcast %20 : vector<1x16xf32> to vector<16x16xf32>
    %22 = arith.addf %19, %21 : vector<16x16xf32>
    %c0_17 = arith.constant 0 : index
    %c0_18 = arith.constant 0 : index
    %23 = vector.load %arg8[%c0_17, %c0_18] : memref<16x16xf32, #tpu.memory_space<vmem>>, vector<16x16xf32>
    tpu.vector_store %arg8[%c0_17, %c0_18], %22 {strides = array<i32>} : memref<16x16xf32, #tpu.memory_space<vmem>>, vector<16x16xf32>,
    return
  }
  func.func @transform_0(%arg0: i32) -> (i32, i32) {
    %c0_i32 = arith.constant 0 : i32
    %c0_i32_0 = arith.constant 0 : i32
    return %arg0, %c0_i32 : i32, i32
  }
  func.func @transform_1(%arg0: i32) -> (i32, i32) {
    %c0_i32 = arith.constant 0 : i32
    %c0_i32_0 = arith.constant 0 : i32
    %c0_i32_1 = arith.constant 0 : i32
    return %c0_i32, %c0_i32_0 : i32, i32
  }
  func.func @transform_2(%arg0: i32) -> (i32, i32) {
    %c0_i32 = arith.constant 0 : i32
    %c0_i32_0 = arith.constant 0 : i32
    %c0_i32_1 = arith.constant 0 : i32
    return %c0_i32, %c0_i32_0 : i32, i32
  }
  func.func @transform_3(%arg0: i32) -> (i32, i32) {
    %c0_i32 = arith.constant 0 : i32
    %c0_i32_0 = arith.constant 0 : i32
    %c0_i32_1 = arith.constant 0 : i32
    return %c0_i32, %c0_i32_0 : i32, i32
  }
  func.func @transform_4(%arg0: i32) -> (i32, i32) {
    %c0_i32 = arith.constant 0 : i32
    %c0_i32_0 = arith.constant 0 : i32
    %c0_i32_1 = arith.constant 0 : i32
    return %c0_i32, %c0_i32_0 : i32, i32
  }
  func.func @transform_5(%arg0: i32) -> (i32, i32) {
    %c0_i32 = arith.constant 0 : i32
    %c0_i32_0 = arith.constant 0 : i32
    %c0_i32_1 = arith.constant 0 : i32
    return %c0_i32, %c0_i32_0 : i32, i32
  }
  func.func @transform_6(%arg0: i32) -> (i32, i32) {
    %c0_i32 = arith.constant 0 : i32
    %c0_i32_0 = arith.constant 0 : i32
    %c0_i32_1 = arith.constant 0 : i32
    return %c0_i32, %c0_i32_0 : i32, i32
  }
  func.func @transform_7(%arg0: i32) -> (i32, i32) {
    %c0_i32 = arith.constant 0 : i32
    %c0_i32_0 = arith.constant 0 : i32
    return %arg0, %c0_i32 : i32, i32
  }
}

</mosaic_0001>

<bundles_post_ra>
// kernel: observation_decoder_mean.1
= control target key start
LH: loop header
LB: loop body
LE: loop exit
PB: predicated region body
PF: predicated region fallthrough
CT: control target
= control target key end

     0   :  { %12 = vsyncpa [#allocation3], 0  ;;  %s932_s0 = inlined_call_operand.vmem [shape: f32[16,32], index: 0, kind: input, shape index: {}]   ;;  %s933_s1 = inlined_call_operand.vmem [shape: bf16[32,256], index: 1, kind: input, shape index: {}]   ;;  %s934_s2 = inlined_call_operand.vmem [shape: f32[1,256], index: 2, kind: input, shape index: {}]   ;;  %s935_s3 = inlined_call_operand.hbm [shape: bf16[256,256], index: 3, kind: input, shape index: {}]   ;;  %s936_s4 = inlined_call_operand.vmem [shape: f32[1,256], index: 4, kind: input, shape index: {}]   ;;  %s937_s5 = inlined_call_operand.vmem [shape: bf16[256,16], index: 5, kind: input, shape index: {}]   ;;  %s938_s6 = inlined_call_operand.vmem [shape: f32[1,16], index: 6, kind: input, shape index: {}]   ;;  %s939_s7 = inlined_call_operand.hbm [shape: f32[16,16], index: 7, kind: output, shape index: {}]  }
   0x1   :  { %13 = vsyncpa [#allocation4], 0  ;;  %s782_s24 = smov [#allocation2]   ;;  %s734_s28 = scalar_lea.hbm %s935_s3, 4096 }
   0x2   :  { %s25_s25 = sshll.u32 %s782_s24, 4  ;;  %p735_p0 = scmp.ne.s32.totalorder %s935_s3, %s734_s28  ;;  %s26_s25 = int_to_ptr.vmem [resolvable:$true] %s25_s25 }
   0x3   :  { %p738_p1 = scmp.lt.u32.totalorder %s734_s28, %s935_s3 }
   0x5   :  { %p740_p2 = pnand %p738_p1, %p735_p0 }
   0x7   :  { %743 = shalt.err (!%p740_p2)
}
   0x8   :  { %s744_s10 = scalar_lea.vmem %s26_s25, 4096  ;;  %p749_p4 = scmp.lt.s32.totalorder %s26_s25, %s26_s25 }
   0x9   :  { %p745_p3 = scmp.ne.s32.totalorder %s26_s25, %s744_s10  ;;  %p750_p5 = scmp.lt.s32.totalorder %s744_s10, %s744_s10 }
   0xb   :  { %p751_p6 = por %p750_p5, %p749_p4 }
   0xd   :  { %p752_p7 = pnand %p751_p6, %p745_p3 }
   0xf   :  { %755 = shalt.err (!%p752_p7)
}
  0x10   :  { %s783_s11 = smov 128   ;;  %s784_s12 = smov 8  }
  0x11   :  { %31 = dma.hbm_to_vmem [thread:$0]  %s935_s3, 4096, %s26_s25, [#allocation3], %s783_s11, %s783_s11, %s784_s12  }
  0x12   :  { %778 = dma.done.wait [#allocation3], 4096  }
  0x13   :  { %779 = vsyncadd [#allocation3], 4294963200  ;;  %v785_v0 = vmov 0   ;;  %v664_v1 = vld [vmem:[%s933_s1 + $0x4] ss:$8 sps:$4 sm:$0xff]   ;;  %vm81_vm0 = vcmask 261120   ;;  %v51_v51 = vlaneseq }
  0x14   :  { %117 = vmatprep.mubr.bf16.mxu0 %v785_v0  ;;  %v666_v2 = vld [vmem:[%s933_s1] ss:$8 sps:$4 sm:$0xff]   ;;  %85 = vmatprep.subr.bf16.mxu0 %v664_v1  ;;  %v667_v3 = vld [vmem:[%s933_s1 + $0x14] ss:$8 sps:$4 sm:$0xff]   ;;  %v669_v4 = vld [vmem:[%s933_s1 + $0x10] ss:$8 sps:$4 sm:$0xff]  }
  0x15   :  { %v42_v5 = vld [vmem:[%s932_s0] sm:$0xff]  ;;  %86 = vmatpush1.bf16.msra.mxu0 %v666_v2  ;;  %v43_v6 = vld [vmem:[%s932_s0 + $0x8] sm:$0xff]  ;;  %v673_v9 = vld [vmem:[#allocation2 + $0x14] ss:$8 sps:$4 sm:$0xff]   ;;  %v52_v52 = vshrl.u32 %v51_v51, 7  ;;  %vm563_vm1 = vcmask 130048  }
  0x16   :  { %87 = vmatprep.subr.bf16.mxu0 %v667_v3  ;;  %v670_v7 = vld [vmem:[#allocation2 + $0x4] ss:$8 sps:$4 sm:$0xff]   ;;  %v672_v8 = vld [vmem:[#allocation2] ss:$8 sps:$4 sm:$0xff]   ;;  %v44_v10 = vpack.c.bf16 %v43_v6, %v42_v5  ;;  %v675_v11 = vld [vmem:[#allocation2 + $0x10] ss:$8 sps:$4 sm:$0xff]  }
  0x17   :  { %338 = vmatprep.subr.bf16.mxu1 %v670_v7  ;;  %v676_v12 = vld [vmem:[#allocation2 + $0x24] ss:$8 sps:$4 sm:$0xff]   ;;  %v678_v13 = vld [vmem:[#allocation2 + $0x20] ss:$8 sps:$4 sm:$0xff]   ;;  %v679_v14 = vld [vmem:[#allocation2 + $0x34] ss:$8 sps:$4 sm:$0xff]  }
  0x18   :  { %339 = vmatpush1.bf16.msra.mxu1 %v672_v8  ;;  %v681_v15 = vld [vmem:[#allocation2 + $0x30] ss:$8 sps:$4 sm:$0xff]   ;;  %v682_v16 = vld [vmem:[#allocation2 + $0x44] ss:$8 sps:$4 sm:$0xff]   ;;  %v684_v17 = vld [vmem:[#allocation2 + $0x40] ss:$8 sps:$4 sm:$0xff]  }
  0x19   :  { %88 = vmatpush1.bf16.msra.mxu0 %v669_v4  ;;  %340 = vmatprep.subr.bf16.mxu1 %v673_v9  ;;  %v685_v18 = vld [vmem:[#allocation2 + $0x54] ss:$8 sps:$4 sm:$0xff]   ;;  %v687_v19 = vld [vmem:[#allocation2 + $0x50] ss:$8 sps:$4 sm:$0xff]   ;;  %v688_v20 = vld [vmem:[#allocation2 + $0x64] ss:$8 sps:$4 sm:$0xff]  }
  0x1a   :  { %v690_v21 = vld [vmem:[#allocation2 + $0x60] ss:$8 sps:$4 sm:$0xff]   ;;  %v691_v22 = vld [vmem:[#allocation2 + $0x74] ss:$8 sps:$4 sm:$0xff]   ;;  %v693_v23 = vld [vmem:[#allocation2 + $0x70] ss:$8 sps:$4 sm:$0xff]  }
  0x1b   :  { %v694_v24 = vld [vmem:[#allocation2 + $0x84] ss:$8 sps:$4 sm:$0xff]   ;;  %v696_v25 = vld [vmem:[#allocation2 + $0x80] ss:$8 sps:$4 sm:$0xff]   ;;  %v697_v26 = vld [vmem:[#allocation2 + $0x94] ss:$8 sps:$4 sm:$0xff]  }
  0x1c   :  { %587 = vmatmul.mubr.msk.bf16.vlgmr.msra.gmra.mrb[0].mxu0 %vm81_vm0, %v44_v10  ;;  %341 = vmatpush1.bf16.msra.mxu1 %v675_v11  ;;  %v699_v27 = vld [vmem:[#allocation2 + $0x90] ss:$8 sps:$4 sm:$0xff]   ;;  %v700_v28 = vld [vmem:[#allocation2 + $0xa4] ss:$8 sps:$4 sm:$0xff]   ;;  %v702_v29 = vld [vmem:[#allocation2 + $0xa0] ss:$8 sps:$4 sm:$0xff]  }
  0x1d   :  { %342 = vmatprep.subr.bf16.mxu1 %v676_v12  ;;  %v703_v30 = vld [vmem:[#allocation2 + $0xb4] ss:$8 sps:$4 sm:$0xff]   ;;  %v705_v31 = vld [vmem:[#allocation2 + $0xb0] ss:$8 sps:$4 sm:$0xff]   ;;  %v706_v32 = vld [vmem:[#allocation2 + $0xc4] ss:$8 sps:$4 sm:$0xff]  }
  0x1e   :  { %v708_v33 = vld [vmem:[#allocation2 + $0xc0] ss:$8 sps:$4 sm:$0xff]   ;;  %v709_v34 = vld [vmem:[#allocation2 + $0xd4] ss:$8 sps:$4 sm:$0xff]   ;;  %v711_v35 = vld [vmem:[#allocation2 + $0xd0] ss:$8 sps:$4 sm:$0xff]  }
  0x1f   :  { %v712_v36 = vld [vmem:[#allocation2 + $0xe4] ss:$8 sps:$4 sm:$0xff]   ;;  %v714_v37 = vld [vmem:[#allocation2 + $0xe0] ss:$8 sps:$4 sm:$0xff]   ;;  %v715_v38 = vld [vmem:[#allocation2 + $0xf4] ss:$8 sps:$4 sm:$0xff]  }
  0x20   :  { %343 = vmatpush1.bf16.msra.mxu1 %v678_v13  ;;  %v717_v39 = vld [vmem:[#allocation2 + $0xf0] ss:$8 sps:$4 sm:$0xff]   ;;  %v718_v40 = vld [vmem:[%s937_s5 + $0x40] sm:$0xff]   ;;  %v720_v42 = vld [vmem:[%s937_s5 + $0x48] sm:$0xff]   ;;  %v53_v53 = vsub.s32 0, %v52_v52  ;;  %v57_v55 = vsub.s32 1, %v52_v52 }
  0x21   :  { %344 = vmatprep.subr.bf16.mxu1 %v679_v14  ;;  %v719_v41 = vld [vmem:[%s937_s5] sm:$0xff]   ;;  %637 = vmatprep.subr.bf16.mxu0 %v718_v40  ;;  %v721_v43 = vld [vmem:[%s937_s5 + $0x8] sm:$0xff]   ;;  %v722_v44 = vld [vmem:[%s937_s5 + $0x50] sm:$0xff]   ;;  %s786_s14 = smov [#allocation5]  }
  0x22   :  { %638 = vmatpush3.bf16.msra.mxu0 %v719_v41  ;;  %v723_v45 = vld [vmem:[%s937_s5 + $0x10] sm:$0xff]   ;;  %v724_v46 = vld [vmem:[%s937_s5 + $0x58] sm:$0xff]   ;;  %v726_v48 = vld [vmem:[%s937_s5 + $0x60] sm:$0xff]   ;;  %s571_s15 = sshll.u32 %s786_s14, 4  ;;  %s572_s15 = int_to_ptr.vmem [resolvable:$true] %s571_s15 }
  0x23   :  { %639 = vmatprep.subr.bf16.mxu0 %v720_v42  ;;  %v725_v47 = vld [vmem:[%s937_s5 + $0x18] sm:$0xff]   ;;  %v727_v49 = vld [vmem:[%s937_s5 + $0x20] sm:$0xff]   ;;  %v728_v50 = vld [vmem:[%s937_s5 + $0x68] sm:$0xff]   ;;  %s756_s16 = scalar_lea.vmem %s572_s15, 256  ;;  %p761_p9 = scmp.lt.s32.totalorder %s572_s15, %s572_s15 }
  0x24   :  { %345 = vmatpush1.bf16.msra.mxu1 %v681_v15  ;;  %v49_v54 = vld [vmem:[%s934_s2] sm:$0x3]  ;;  %v729_v8 = vld [vmem:[%s937_s5 + $0x28] sm:$0xff]   ;;  %v730_v9 = vld [vmem:[%s937_s5 + $0x70] sm:$0xff]   ;;  %p757_p8 = scmp.ne.s32.totalorder %s572_s15, %s756_s16  ;;  %p762_p10 = scmp.lt.s32.totalorder %s756_s16, %s756_s16 }
  0x25   :  { %346 = vmatprep.subr.bf16.mxu1 %v682_v16  ;;  %v54_v56 = vrot.slane %v49_v54, %v53_v53  ;;  %v58_v57 = vrot.slane %v49_v54, %v57_v55  ;;  %v731_v10 = vld [vmem:[%s937_s5 + $0x30] sm:$0xff]   ;;  %v732_v11 = vld [vmem:[%s937_s5 + $0x78] sm:$0xff]   ;;  %v166_v13 = vld [vmem:[%s936_s4] sm:$0x3] }
  0x26   :  { %640 = vmatpush3.bf16.msra.mxu0 %v721_v43  ;;  %v733_v12 = vld [vmem:[%s937_s5 + $0x38] sm:$0xff]   ;;  %v171_v14 = vrot.slane %v166_v13, %v53_v53  ;;  %v175_v15 = vrot.slane %v166_v13, %v57_v55  ;;  %p763_p11 = por %p762_p10, %p761_p9 }
  0x27   :  { %641 = vmatprep.subr.bf16.mxu0 %v722_v44 }
  0x28   :  { %347 = vmatpush1.bf16.msra.mxu1 %v684_v17  ;;  %p764_p12 = pnand %p763_p11, %p757_p8 }
  0x29   :  { %348 = vmatprep.subr.bf16.mxu1 %v685_v18 }
  0x2a   :  { %642 = vmatpush3.bf16.msra.mxu0 %v723_v45 }
  0x2b   :  { %643 = vmatprep.subr.bf16.mxu0 %v724_v46 }
  0x2c   :  { %349 = vmatpush1.bf16.msra.mxu1 %v687_v19 }
  0x2d   :  { %350 = vmatprep.subr.bf16.mxu1 %v688_v20 }
  0x2e   :  { %644 = vmatpush3.bf16.msra.mxu0 %v725_v47 }
  0x2f   :  { %645 = vmatprep.subr.bf16.mxu0 %v726_v48 }
  0x30   :  { %351 = vmatpush1.bf16.msra.mxu1 %v690_v21 }
  0x31   :  { %352 = vmatprep.subr.bf16.mxu1 %v691_v22 }
  0x32   :  { %646 = vmatpush3.bf16.msra.mxu0 %v727_v49 }
  0x33   :  { %647 = vmatprep.subr.bf16.mxu0 %v728_v50 }
  0x34   :  { %353 = vmatpush1.bf16.msra.mxu1 %v693_v23 }
  0x35   :  { %354 = vmatprep.subr.bf16.mxu1 %v694_v24 }
  0x36   :  { %648 = vmatpush3.bf16.msra.mxu0 %v729_v8 }
  0x37   :  { %649 = vmatprep.subr.bf16.mxu0 %v730_v9 }
  0x38   :  { %355 = vmatpush1.bf16.msra.mxu1 %v696_v25 }
  0x39   :  { %356 = vmatprep.subr.bf16.mxu1 %v697_v26 }
  0x3a   :  { %650 = vmatpush3.bf16.msra.mxu0 %v731_v10 }
  0x3b   :  { %651 = vmatprep.subr.bf16.mxu0 %v732_v11 }
  0x3c   :  { %357 = vmatpush1.bf16.msra.mxu1 %v699_v27 }
  0x3d   :  { %358 = vmatprep.subr.bf16.mxu1 %v700_v28 }
  0x3e   :  { %652 = vmatpush3.bf16.msra.mxu0 %v733_v12 }
  0x40   :  { %359 = vmatpush1.bf16.msra.mxu1 %v702_v29 }
  0x41   :  { %360 = vmatprep.subr.bf16.mxu1 %v703_v30 }
  0x44   :  { %361 = vmatpush1.bf16.msra.mxu1 %v705_v31  ;;  %v620_v31 = vld [vmem:[%s938_s6] ss:$0 sm:$0xff] }
  0x45   :  { %362 = vmatprep.subr.bf16.mxu1 %v706_v32 }
  0x48   :  { %363 = vmatpush1.bf16.msra.mxu1 %v708_v33 }
  0x49   :  { %364 = vmatprep.subr.bf16.mxu1 %v709_v34 }
  0x4c   :  { %365 = vmatpush1.bf16.msra.mxu1 %v711_v35 }
  0x4d   :  { %366 = vmatprep.subr.bf16.mxu1 %v712_v36 }
  0x50   :  { %367 = vmatpush1.bf16.msra.mxu1 %v714_v37 }
  0x51   :  { %368 = vmatprep.subr.bf16.mxu1 %v715_v38 }
  0x54   :  { %369 = vmatpush1.bf16.msra.mxu1 %v717_v39 }
  0xef   :  { %v119_v58 = vpop.f32.mrb[0].mxu0 }
  0xf0   :  { %v120_v59 = vadd.f32 %v119_v58, %v54_v56  ;;  %v121_v60 = vpop.f32.mrb[1].mxu0 }
  0xf1   :  { %v122_v61 = vadd.f32 %v121_v60, %v58_v57  ;;  %v123_v62 = vpop.f32.mrb[2].mxu0 }
  0xf2   :  { %v124_v63 = vadd.f32 %v123_v62, %v54_v56  ;;  %v125_v0 = vpop.f32.mrb[3].mxu0  ;;  %v128_v2 = vmax.f32 %v120_v59, 0.0 }
  0xf3   :  { %v126_v1 = vadd.f32 %v125_v0, %v58_v57  ;;  %v129_v4 = vmax.f32 %v122_v61, 0.0 }
  0xf4   :  { %v130_v3 = vmax.f32 %v124_v63, 0.0 }
  0xf5   :  { %v131_v5 = vmax.f32 %v126_v1, 0.0 }
  0xf6   :  { %v132_v6 = vpack.c.bf16 %v130_v3, %v128_v2 }
  0xf7   :  { %v133_v7 = vpack.c.bf16 %v131_v5, %v129_v4 }
  0xf9   :  { %370 = vmatprep.mubr.bf16.mxu1 %v133_v7 }
  0xfa   :  { %371 = vmatmul.mubr.bf16.vlgmr.msra.gmra.mrb[0].mxu1 %v132_v6 }
 0x1cd   :  { %v372_v16 = vpop.f32.mrb[0].mxu1 }
 0x1ce   :  { %v373_v17 = vadd.f32 %v372_v16, %v171_v14  ;;  %v374_v18 = vpop.f32.mrb[1].mxu1 }
 0x1cf   :  { %v375_v19 = vadd.f32 %v374_v18, %v175_v15  ;;  %v376_v20 = vpop.f32.mrb[2].mxu1 }
 0x1d0   :  { %v377_v21 = vadd.f32 %v376_v20, %v171_v14  ;;  %v378_v22 = vpop.f32.mrb[3].mxu1  ;;  %v381_v24 = vmax.f32 %v373_v17, 0.0 }
 0x1d1   :  { %v379_v23 = vadd.f32 %v378_v22, %v175_v15  ;;  %v382_v26 = vmax.f32 %v375_v19, 0.0 }
 0x1d2   :  { %v383_v25 = vmax.f32 %v377_v21, 0.0 }
 0x1d3   :  { %v384_v27 = vmax.f32 %v379_v23, 0.0 }
 0x1d4   :  { %v385_v28 = vpack.c.bf16 %v383_v25, %v381_v24 }
 0x1d5   :  { %v386_v29 = vpack.c.bf16 %v384_v27, %v382_v26 }
 0x1d7   :  { %554 = vmatprep.mubr.bf16.mxu0 %v386_v29 }
 0x1d8   :  { %555 = vmatmul.mubr.bf16.vlgmr.msra.gmra.mrb[4].mxu0 %v385_v28 }
 0x2ab   :  { %v653_v30 = vpop.f32.mrb[4].mxu0 }
 0x2ac   :  { %v654_v32 = vpop.f32.mrb[5].mxu0 }
 0x2ad   :  { %v655_v33 = vadd.f32 %v654_v32, %v653_v30  ;;  %v656_v34 = vpop.f32.mrb[6].mxu0 }
 0x2ae   :  { %v657_v35 = vpop.f32.mrb[7].mxu0 }
 0x2af   :  { %v557_v36 = vadd.f32 %v655_v33, %v620_v31  ;;  %v658_v37 = vadd.f32 %v657_v35, %v656_v34 }
 0x2b1   :  { %v560_v38 = vadd.f32 %v658_v37, %v620_v31  ;;  %564 = vst.msk [vmem:[#allocation5] sm:$0xff] %vm563_vm1, %v557_v36 }
 0x2b3   :  { %565 = vst.msk [vmem:[#allocation5 + $0x8] sm:$0xff] %vm563_vm1, %v560_v38 }
 0x2b4   :  { %767 = shalt.err (!%p764_p12)
}
 0x2b5   :  { %s768_s18 = scalar_lea.hbm %s939_s7, 256 }
 0x2b6   :  { %p769_p13 = scmp.ne.s32.totalorder %s939_s7, %s768_s18  ;;  %p772_p0 = scmp.lt.u32.totalorder %s768_s18, %s939_s7 }
 0x2b8   :  { %p774_p1 = pnand %p772_p0, %p769_p13 }
 0x2ba   :  { %777 = shalt.err (!%p774_p1)
}
 0x2bb   :  { %577 = dma.vmem_to_hbm [thread:$0]  %s572_s15, 256, %s939_s7, [#allocation4], %s783_s11, %s783_s11, %s784_s12  }
 0x2bc   :  { %780 = dma.done.wait [#allocation4], 256  }
 0x2bd   :  { %781 = vsyncadd [#allocation4], 4294967040 }
 0x2be   :  { %581 = vsyncpa [#allocation3], 1 }
 0x2bf   :  { %582 = vsyncpa [#allocation4], 1 }

</bundles_post_ra>
